<compile_context>
chip_gen: v7x
topology: tpu7x:2x2x1
jax: 0.10.0
libtpu: 0.0.40
codegen_flags: <defaults>
</compile_context>

<pallas_src>
import math
import functools

import jax
import jax.numpy as jnp
from jax.experimental import pallas as pl
from jax.experimental.pallas import tpu as pltpu


# ---------------------------------------------------------------------------
# Small helpers
# ---------------------------------------------------------------------------

_GOLDEN_I32 = 0x9E3779B9 - (1 << 32)     # golden-ratio odd constant, as int32
_MIX1_I32 = 0x7FEB352D                   # lowbias32 multiplier 1
_MIX2_I32 = 0x846CA68B - (1 << 32)       # lowbias32 multiplier 2, as int32


def _layer_norm(h, g, b, eps=1e-5):
    mu = jnp.mean(h, axis=-1, keepdims=True)
    var = jnp.mean((h - mu) ** 2, axis=-1, keepdims=True)
    return (h - mu) * jax.lax.rsqrt(var + eps) * g + b


def _lowbias32(z):
    """lowbias32 integer mixer on int32 (logical shifts emulated via mask)."""
    z = z ^ ((z >> 16) & jnp.int32(0xFFFF))
    z = z * jnp.int32(_MIX1_I32)
    z = z ^ ((z >> 15) & jnp.int32(0x1FFFF))
    z = z * jnp.int32(_MIX2_I32)
    z = z ^ ((z >> 16) & jnp.int32(0xFFFF))
    return z


def _dropout_bits(row0, n_rows, n_cols, seed):
    """Deterministic per-element int32 values uniform in [0, 2^31), tiling-invariant."""
    rows = jax.lax.broadcasted_iota(jnp.int32, (n_rows, n_cols), 0) + row0
    cols = jax.lax.broadcasted_iota(jnp.int32, (n_rows, n_cols), 1)
    z = rows * n_cols + cols
    z = z ^ (seed * jnp.int32(_GOLDEN_I32))
    z = _lowbias32(z)
    return z & jnp.int32(0x7FFFFFFF)


# ---------------------------------------------------------------------------
# Kernel
# ---------------------------------------------------------------------------

def mixed_pos_encoder_kernel(
    seed_ref,                           # SMEM scalar-prefetch: (1,) int32
    x_ref, pos_ref, mask_ref,           # VMEM: (Bt,S,D) f32, (S,D) f32, (Bt,1,S) f32
    wqkv_ref, bqkv_ref,                 # (D,3D) bf16, (1,3D) f32
    wo_ref, bo_ref,                     # (D,D)  bf16, (1,D)  f32
    w1_ref, b1_ref, w2_ref, b2_ref,     # (D,F)  bf16, (1,F) f32, (F,D) bf16, (1,D) f32
    g1_ref, be1_ref, g2_ref, be2_ref,   # LayerNorm params, (1,D) f32
    out_ref,                            # (Bt,S,D)
    *, dropout_p):
    Bt, S, D = x_ref.shape
    M = Bt * S

    # ---- positional encoding add: x + pos_embed[:, :S] (f32) ----
    x = x_ref[...].astype(jnp.float32) + pos_ref[...][None].astype(jnp.float32)
    x = x.reshape(M, D)                               # flatten rows for big MXU matmuls

    # ---- dropout (inverted dropout, training-mode nn.Dropout) ----
    if dropout_p > 0.0:
        row0 = pl.program_id(0) * M                   # global row offset of this tile
        r = _dropout_bits(row0, M, D, seed_ref[0])
        thresh = jnp.int32(int(dropout_p * 2147483648.0))
        keep = r >= thresh
        x = jnp.where(keep, x * (1.0 / (1.0 - dropout_p)), 0.0)

    # ---- fused QKV projection: one (M, D) x (D, 3D) MXU pass, bf16 operands, f32 accum ----
    qkv = jnp.dot(x.astype(jnp.bfloat16), wqkv_ref[...],
                  preferred_element_type=jnp.float32) + bqkv_ref[...]
    q = qkv[:, :D].reshape(Bt, S, D)
    k = qkv[:, D:2 * D].reshape(Bt, S, D)
    v = qkv[:, 2 * D:].reshape(Bt, S, D)

    # ---- single-head masked self-attention ----
    bias = (mask_ref[...].astype(jnp.float32) - 1.0) * 1e9        # (Bt,1,S): 0 keep, -1e9 pad
    scores = jnp.einsum('bqd,bkd->bqk',
                        q.astype(jnp.bfloat16), k.astype(jnp.bfloat16),
                        preferred_element_type=jnp.float32) * (1.0 / math.sqrt(D))
    scores = scores + bias
    scores = scores - jnp.max(scores, axis=-1, keepdims=True)
    p = jnp.exp(scores)
    l = jnp.sum(p, axis=-1, keepdims=True)
    ctx = jnp.einsum('bqk,bkd->bqd',
                     p.astype(jnp.bfloat16), v.astype(jnp.bfloat16),
                     preferred_element_type=jnp.float32)
    ctx = (ctx * (1.0 / l)).reshape(M, D)

    o = jnp.dot(ctx.astype(jnp.bfloat16), wo_ref[...],
                preferred_element_type=jnp.float32) + bo_ref[...]
    h = _layer_norm(x + o, g1_ref[...], be1_ref[...])

    # ---- feed-forward (ReLU), bf16 MXU operands, f32 accum ----
    ff = jnp.dot(h.astype(jnp.bfloat16), w1_ref[...],
                 preferred_element_type=jnp.float32) + b1_ref[...]
    ff = jnp.maximum(ff, 0.0)
    ff = jnp.dot(ff.astype(jnp.bfloat16), w2_ref[...],
                 preferred_element_type=jnp.float32) + b2_ref[...]

    out = _layer_norm(h + ff, g2_ref[...], be2_ref[...])
    out_ref[...] = out.reshape(Bt, S, D).astype(out_ref.dtype)


# ---------------------------------------------------------------------------
# Parameters (matches the PyTorch module's initializers)
# ---------------------------------------------------------------------------

def init_params(key, learned_positions, d_model, d_ff, max_len):
    ks = jax.random.split(key, 8)

    # learned_encodings ~ kaiming_uniform_(a=sqrt(5)) on (L, D): bound = 1/sqrt(fan_in=D)
    bound = 1.0 / math.sqrt(d_model)
    learned = jax.random.uniform(ks[0], (learned_positions, d_model),
                                 jnp.float32, -bound, bound)

    # fixed sinusoidal encodings (Vaswani et al.)
    position = jnp.arange(max_len, dtype=jnp.float32)[:, None]
    div_term = jnp.exp(jnp.arange(0, d_model, 2, dtype=jnp.float32)
                       * (-(math.log(10000.0) / d_model)))
    pe = jnp.zeros((max_len, d_model), jnp.float32)
    pe = pe.at[:, 0::2].set(jnp.sin(position * div_term))
    pe = pe.at[:, 1::2].set(jnp.cos(position * div_term))

    pos_embed = jnp.concatenate([learned, pe], axis=0)            # (L + max_len, D)

    def linear(k, fan_in, fan_out):
        b = 1.0 / math.sqrt(fan_in)
        kw, kb = jax.random.split(k)
        w = jax.random.uniform(kw, (fan_in, fan_out), jnp.float32, -b, b)
        bias = jax.random.uniform(kb, (1, fan_out), jnp.float32, -b, b)
        return w, bias

    wq, bq = linear(ks[1], d_model, d_model)
    wk, bk = linear(ks[2], d_model, d_model)
    wv, bv = linear(ks[3], d_model, d_model)
    wo, bo = linear(ks[4], d_model, d_model)
    w1, b1 = linear(ks[5], d_model, d_ff)
    w2, b2 = linear(ks[6], d_ff, d_model)

    return dict(
        pos_embed=pos_embed,
        wq=wq, bq=bq, wk=wk, bk=bk, wv=wv, bv=bv, wo=wo, bo=bo,
        w1=w1, b1=b1, w2=w2, b2=b2,
        g1=jnp.ones((1, d_model), jnp.float32), be1=jnp.zeros((1, d_model), jnp.float32),
        g2=jnp.ones((1, d_model), jnp.float32), be2=jnp.zeros((1, d_model), jnp.float32),
    )


# ---------------------------------------------------------------------------
# Wrapper
# ---------------------------------------------------------------------------

def _pick_batch_tile(B, S, D, F, budget_bytes=4 << 20):
    """Largest divisor of B whose f32 working set fits a modest VMEM budget (v7x-safe)."""
    per_batch = (10 * S * D + 2 * S * F + 3 * S * S) * 4
    cap = max(1, budget_bytes // max(per_batch, 1))
    bt = 1
    for d in range(1, B + 1):
        if B % d == 0 and d <= cap:
            bt = d
    return bt


def _resident(arr):
    """BlockSpec for a weight/bias that stays resident in VMEM across all grid steps."""
    nd = arr.ndim
    return pl.BlockSpec(arr.shape, lambda *_: (0,) * nd)


def mixed_positional_encoder(x, mask, params, *, dropout_p=0.1, seed=0, batch_tile=None):
    """x: (B, S, D) float32; mask: (B, S) float32 (1.0 = attend, 0.0 = pad)."""
    B, S, D = x.shape
    F = params['w1'].shape[1]

    pos = params['pos_embed'][:S]                                  # (S, D)
    mask_b = mask.reshape(B, 1, S).astype(jnp.float32)             # (B, 1, S) key-padding mask

    # Fuse Q/K/V weights; keep bf16 weights for the MXU, f32 biases / LN params for the VPU.
    wqkv = jnp.concatenate([params['wq'], params['wk'], params['wv']],
                           axis=1).astype(jnp.bfloat16)            # (D, 3D)
    bqkv = jnp.concatenate([params['bq'], params['bk'], params['bv']], axis=1)   # (1, 3D)
    wo = params['wo'].astype(jnp.bfloat16)
    w1 = params['w1'].astype(jnp.bfloat16)
    w2 = params['w2'].astype(jnp.bfloat16)

    if batch_tile is None:
        batch_tile = _pick_batch_tile(B, S, D, F)
    if B % batch_tile != 0:
        raise ValueError(f"batch_tile={batch_tile} must divide B={B}")
    Bt = batch_tile
    grid = (B // Bt,)

    kernel = functools.partial(mixed_pos_encoder_kernel, dropout_p=dropout_p)

    in_specs = [
        pl.BlockSpec((Bt, S, D), lambda b, s: (b, 0, 0)),          # x
        _resident(pos),                                            # pos
        pl.BlockSpec((Bt, 1, S), lambda b, s: (b, 0, 0)),          # mask
        _resident(wqkv), _resident(bqkv),
        _resident(wo), _resident(params['bo']),
        _resident(w1), _resident(params['b1']),
        _resident(w2), _resident(params['b2']),
        _resident(params['g1']), _resident(params['be1']),
        _resident(params['g2']), _resident(params['be2']),
    ]
    out_spec = pl.BlockSpec((Bt, S, D), lambda b, s: (b, 0, 0))

    grid_spec = pltpu.PrefetchScalarGridSpec(
        num_scalar_prefetch=1,
        grid=grid,
        in_specs=in_specs,
        out_specs=out_spec,
    )

    return pl.pallas_call(
        kernel,
        out_shape=jax.ShapeDtypeStruct((B, S, D), x.dtype),
        grid_spec=grid_spec,
        compiler_params=pltpu.CompilerParams(
            dimension_semantics=("parallel",),       # batch tiles shard across TCs on v7x
            vmem_limit_bytes=32 * 1024 * 1024,       # safe on v5e/v6e/v7x
        ),
    )(
        jnp.asarray([seed], jnp.int32),
        x, pos, mask_b,
        wqkv, bqkv, wo, params['bo'], w1, params['b1'], w2, params['b2'],
        params['g1'], params['be1'], params['g2'], params['be2'],
    )


# ---------------------------------------------------------------------------
# Demo
# ---------------------------------------------------------------------------

if __name__ == "__main__":
    B, S, D, DFF = 2, 8, 32, 64
    LEARNED_POSITIONS, MAX_LEN = 4, 64
    DROPOUT_P = 0.1

    root = jax.random.PRNGKey(0)
    kx, kp = jax.random.split(root)

    x = jax.random.normal(kx, (B, S, D), jnp.float32)
    mask = jnp.ones((B, S), jnp.float32).at[1, 6:].set(0.0)   # pad last 2 tokens of batch 1

    params = init_params(kp, LEARNED_POSITIONS, D, DFF, MAX_LEN)

    # batch_tile=1 exercises a multi-step grid (grid=(2,)) at these tiny demo shapes.
    out = mixed_positional_encoder(x, mask, params, dropout_p=DROPOUT_P, seed=0, batch_tile=1)
    out = jax.block_until_ready(out)

    assert out.shape == (B, S, D), out.shape
    assert bool(jnp.all(jnp.isfinite(out)))
    print("KERNEL_OK")
</pallas_src>

<mosaic_0001>
module attributes {stable_mosaic.version = 11 : i64} {
  func.func @mixed_pos_encoder_kernel(%arg0: i32, %arg1: memref<1xi32, #tpu.memory_space<smem>>, %arg2: memref<1x8x32xf32, #tpu.memory_space<vmem>>, %arg3: memref<8x32xf32, #tpu.memory_space<vmem>>, %arg4: memref<1x1x8xf32, #tpu.memory_space<vmem>>, %arg5: memref<32x96xbf16, #tpu.memory_space<vmem>>, %arg6: memref<1x96xf32, #tpu.memory_space<vmem>>, %arg7: memref<32x32xbf16, #tpu.memory_space<vmem>>, %arg8: memref<1x32xf32, #tpu.memory_space<vmem>>, %arg9: memref<32x64xbf16, #tpu.memory_space<vmem>>, %arg10: memref<1x64xf32, #tpu.memory_space<vmem>>, %arg11: memref<64x32xbf16, #tpu.memory_space<vmem>>, %arg12: memref<1x32xf32, #tpu.memory_space<vmem>>, %arg13: memref<1x32xf32, #tpu.memory_space<vmem>>, %arg14: memref<1x32xf32, #tpu.memory_space<vmem>>, %arg15: memref<1x32xf32, #tpu.memory_space<vmem>>, %arg16: memref<1x32xf32, #tpu.memory_space<vmem>>, %arg17: memref<1x8x32xf32, #tpu.memory_space<vmem>>) attributes {dimension_semantics = [#tpu.dimension_semantics<parallel>], iteration_bounds = array<i64: 2>, scalar_prefetch = 1 : i64, scratch_operands = 0 : i64, tpu.core_type = #tpu.core_type<tc>, window_params = [{transform_indices = @transform_0, window_bounds = array<i64: 1, 8, 32>}, {pipeline_mode = #tpu.pipeline_mode<synchronous>, transform_indices = @transform_1, window_bounds = array<i64: 8, 32>}, {transform_indices = @transform_2, window_bounds = array<i64: 1, 1, 8>}, {pipeline_mode = #tpu.pipeline_mode<synchronous>, transform_indices = @transform_3, window_bounds = array<i64: 32, 96>}, {pipeline_mode = #tpu.pipeline_mode<synchronous>, transform_indices = @transform_4, window_bounds = array<i64: 1, 96>}, {pipeline_mode = #tpu.pipeline_mode<synchronous>, transform_indices = @transform_5, window_bounds = array<i64: 32, 32>}, {pipeline_mode = #tpu.pipeline_mode<synchronous>, transform_indices = @transform_6, window_bounds = array<i64: 1, 32>}, {pipeline_mode = #tpu.pipeline_mode<synchronous>, transform_indices = @transform_7, window_bounds = array<i64: 32, 64>}, {pipeline_mode = #tpu.pipeline_mode<synchronous>, transform_indices = @transform_8, window_bounds = array<i64: 1, 64>}, {pipeline_mode = #tpu.pipeline_mode<synchronous>, transform_indices = @transform_9, window_bounds = array<i64: 64, 32>}, {pipeline_mode = #tpu.pipeline_mode<synchronous>, transform_indices = @transform_10, window_bounds = array<i64: 1, 32>}, {pipeline_mode = #tpu.pipeline_mode<synchronous>, transform_indices = @transform_11, window_bounds = array<i64: 1, 32>}, {pipeline_mode = #tpu.pipeline_mode<synchronous>, transform_indices = @transform_12, window_bounds = array<i64: 1, 32>}, {pipeline_mode = #tpu.pipeline_mode<synchronous>, transform_indices = @transform_13, window_bounds = array<i64: 1, 32>}, {pipeline_mode = #tpu.pipeline_mode<synchronous>, transform_indices = @transform_14, window_bounds = array<i64: 1, 32>}, {transform_indices = @transform_15, window_bounds = array<i64: 1, 8, 32>}]} {
    %c0 = arith.constant 0 : index
    %c0_0 = arith.constant 0 : index
    %c0_1 = arith.constant 0 : index
    %0 = vector.load %arg2[%c0, %c0_0, %c0_1] : memref<1x8x32xf32, #tpu.memory_space<vmem>>, vector<1x8x32xf32>
    %c0_2 = arith.constant 0 : index
    %c0_3 = arith.constant 0 : index
    %1 = vector.load %arg3[%c0_2, %c0_3] : memref<8x32xf32, #tpu.memory_space<vmem>>, vector<8x32xf32>
    %2 = vector.shape_cast %1 : vector<8x32xf32> to vector<1x8x32xf32>
    %3 = arith.addf %0, %2 : vector<1x8x32xf32>
    %4 = vector.shape_cast %3 : vector<1x8x32xf32> to vector<8x32xf32>
    %c8_i32 = arith.constant 8 : i32
    %5 = arith.muli %arg0, %c8_i32 : i32
    %c0_4 = arith.constant 0 : index
    %6 = memref.load %arg1[%c0_4] : memref<1xi32, #tpu.memory_space<smem>>
    %7 = tpu.iota {dimensions = array<i32: 0>} : vector<8x32xi32>
    %8 = vector.broadcast %5 : i32 to vector<8x32xi32>
    %9 = arith.addi %7, %8 : vector<8x32xi32>
    %10 = tpu.iota {dimensions = array<i32: 1>} : vector<8x32xi32>
    %c32_i32 = arith.constant 32 : i32
    %11 = vector.broadcast %c32_i32 : i32 to vector<8x32xi32>
    %12 = arith.muli %9, %11 : vector<8x32xi32>
    %13 = arith.addi %12, %10 : vector<8x32xi32>
    %c-1640531527_i32 = arith.constant -1640531527 : i32
    %14 = arith.muli %6, %c-1640531527_i32 : i32
    %15 = vector.broadcast %14 : i32 to vector<8x32xi32>
    %16 = arith.xori %13, %15 : vector<8x32xi32>
    %c16_i32 = arith.constant 16 : i32
    %17 = vector.broadcast %c16_i32 : i32 to vector<8x32xi32>
    %18 = arith.shrsi %16, %17 : vector<8x32xi32>
    %c65535_i32 = arith.constant 65535 : i32
    %19 = vector.broadcast %c65535_i32 : i32 to vector<8x32xi32>
    %20 = arith.andi %18, %19 : vector<8x32xi32>
    %21 = arith.xori %16, %20 : vector<8x32xi32>
    %c2146121005_i32 = arith.constant 2146121005 : i32
    %22 = vector.broadcast %c2146121005_i32 : i32 to vector<8x32xi32>
    %23 = arith.muli %21, %22 : vector<8x32xi32>
    %c15_i32 = arith.constant 15 : i32
    %24 = vector.broadcast %c15_i32 : i32 to vector<8x32xi32>
    %25 = arith.shrsi %23, %24 : vector<8x32xi32>
    %c131071_i32 = arith.constant 131071 : i32
    %26 = vector.broadcast %c131071_i32 : i32 to vector<8x32xi32>
    %27 = arith.andi %25, %26 : vector<8x32xi32>
    %28 = arith.xori %23, %27 : vector<8x32xi32>
    %c-2073254261_i32 = arith.constant -2073254261 : i32
    %29 = vector.broadcast %c-2073254261_i32 : i32 to vector<8x32xi32>
    %30 = arith.muli %28, %29 : vector<8x32xi32>
    %c16_i32_5 = arith.constant 16 : i32
    %31 = vector.broadcast %c16_i32_5 : i32 to vector<8x32xi32>
    %32 = arith.shrsi %30, %31 : vector<8x32xi32>
    %c65535_i32_6 = arith.constant 65535 : i32
    %33 = vector.broadcast %c65535_i32_6 : i32 to vector<8x32xi32>
    %34 = arith.andi %32, %33 : vector<8x32xi32>
    %35 = arith.xori %30, %34 : vector<8x32xi32>
    %c2147483647_i32 = arith.constant 2147483647 : i32
    %36 = vector.broadcast %c2147483647_i32 : i32 to vector<8x32xi32>
    %37 = arith.andi %35, %36 : vector<8x32xi32>
    %c214748364_i32 = arith.constant 214748364 : i32
    %38 = vector.broadcast %c214748364_i32 : i32 to vector<8x32xi32>
    %39 = arith.cmpi sge, %37, %38 : vector<8x32xi32>
    %cst = arith.constant 1.11111116 : f32
    %40 = vector.broadcast %cst : f32 to vector<8x32xf32>
    %41 = arith.mulf %4, %40 : vector<8x32xf32>
    %cst_7 = arith.constant 0.000000e+00 : f32
    %42 = vector.broadcast %cst_7 : f32 to vector<8x32xf32>
    %43 = arith.select %39, %41, %42 : vector<8x32xi1>, vector<8x32xf32>
    %44 = arith.truncf %43 : vector<8x32xf32> to vector<8x32xbf16>
    %c0_8 = arith.constant 0 : index
    %c0_9 = arith.constant 0 : index
    %45 = vector.load %arg5[%c0_8, %c0_9] : memref<32x96xbf16, #tpu.memory_space<vmem>>, vector<32x96xbf16>
    %cst_10 = arith.constant dense<0.000000e+00> : vector<8x96xf32>
    %46 = tpu.matmul %44, %45, %cst_10 {dimension_numbers = #tpu.dot_dimension_numbers<[1], [0], [0], [1], [0, 0, 1, 1], [], []>} : vector<8x32xbf16>, vector<32x96xbf16>, vector<8x96xf32> -> vector<8x96xf32>
    %c0_11 = arith.constant 0 : index
    %c0_12 = arith.constant 0 : index
    %47 = vector.load %arg6[%c0_11, %c0_12] : memref<1x96xf32, #tpu.memory_space<vmem>>, vector<1x96xf32>
    %48 = vector.broadcast %47 : vector<1x96xf32> to vector<8x96xf32>
    %49 = arith.addf %46, %48 : vector<8x96xf32>
    %50 = vector.extract_strided_slice %49 {offsets = [0, 0], sizes = [8, 32], strides = [1, 1]} : vector<8x96xf32> to vector<8x32xf32>
    %51 = vector.shape_cast %50 : vector<8x32xf32> to vector<1x8x32xf32>
    %52 = vector.extract_strided_slice %49 {offsets = [0, 32], sizes = [8, 32], strides = [1, 1]} : vector<8x96xf32> to vector<8x32xf32>
    %53 = vector.shape_cast %52 : vector<8x32xf32> to vector<1x8x32xf32>
    %54 = vector.extract_strided_slice %49 {offsets = [0, 64], sizes = [8, 32], strides = [1, 1]} : vector<8x96xf32> to vector<8x32xf32>
    %55 = vector.shape_cast %54 : vector<8x32xf32> to vector<1x8x32xf32>
    %c0_13 = arith.constant 0 : index
    %c0_14 = arith.constant 0 : index
    %c0_15 = arith.constant 0 : index
    %56 = vector.load %arg4[%c0_13, %c0_14, %c0_15] : memref<1x1x8xf32, #tpu.memory_space<vmem>>, vector<1x1x8xf32>
    %cst_16 = arith.constant 1.000000e+00 : f32
    %57 = vector.broadcast %cst_16 : f32 to vector<1x1x8xf32>
    %58 = arith.subf %56, %57 : vector<1x1x8xf32>
    %cst_17 = arith.constant 1.000000e+09 : f32
    %59 = vector.broadcast %cst_17 : f32 to vector<1x1x8xf32>
    %60 = arith.mulf %58, %59 : vector<1x1x8xf32>
    %61 = arith.truncf %51 : vector<1x8x32xf32> to vector<1x8x32xbf16>
    %62 = arith.truncf %53 : vector<1x8x32xf32> to vector<1x8x32xbf16>
    "tpu.trace_start"() <{level = 10 : i32, message = "bqd,bkd->bqk"}> : () -> ()
    %cst_18 = arith.constant dense<0.000000e+00> : vector<1x8x8xf32>
    %63 = tpu.matmul %61, %62, %cst_18 {dimension_numbers = #tpu.dot_dimension_numbers<[2], [2], [1], [1], [0, 0, 0, 1, 1, 1], [0], [0]>} : vector<1x8x32xbf16>, vector<1x8x32xbf16>, vector<1x8x8xf32> -> vector<1x8x8xf32>
    "tpu.trace_stop"() : () -> ()
    %cst_19 = arith.constant 0.176776692 : f32
    %64 = vector.broadcast %cst_19 : f32 to vector<1x8x8xf32>
    %65 = arith.mulf %63, %64 : vector<1x8x8xf32>
    %66 = vector.broadcast %60 : vector<1x1x8xf32> to vector<1x8x8xf32>
    %67 = arith.addf %65, %66 : vector<1x8x8xf32>
    %cst_20 = arith.constant dense<0xFF800000> : vector<1x8xf32>
    %68 = vector.multi_reduction <maximumf>, %67, %cst_20 [2] : vector<1x8x8xf32> to vector<1x8xf32>
    %69 = vector.shape_cast %68 : vector<1x8xf32> to vector<1x8x1xf32>
    %70 = vector.broadcast %69 : vector<1x8x1xf32> to vector<1x8x8xf32>
    %71 = arith.subf %67, %70 : vector<1x8x8xf32>
    %72 = math.exp %71 : vector<1x8x8xf32>
    %cst_21 = arith.constant dense<0.000000e+00> : vector<1x8xf32>
    %73 = vector.multi_reduction <add>, %72, %cst_21 [2] : vector<1x8x8xf32> to vector<1x8xf32>
    %74 = vector.shape_cast %73 : vector<1x8xf32> to vector<1x8x1xf32>
    %75 = arith.truncf %72 : vector<1x8x8xf32> to vector<1x8x8xbf16>
    %76 = arith.truncf %55 : vector<1x8x32xf32> to vector<1x8x32xbf16>
    "tpu.trace_start"() <{level = 10 : i32, message = "bqk,bkd->bqd"}> : () -> ()
    %cst_22 = arith.constant dense<0.000000e+00> : vector<1x8x32xf32>
    %77 = tpu.matmul %75, %76, %cst_22 {dimension_numbers = #tpu.dot_dimension_numbers<[2], [1], [1], [2], [0, 0, 0, 1, 1, 2], [0], [0]>} : vector<1x8x8xbf16>, vector<1x8x32xbf16>, vector<1x8x32xf32> -> vector<1x8x32xf32>
    "tpu.trace_stop"() : () -> ()
    %cst_23 = arith.constant 1.000000e+00 : f32
    %78 = vector.broadcast %cst_23 : f32 to vector<1x8x1xf32>
    %79 = arith.divf %78, %74 : vector<1x8x1xf32>
    %80 = vector.broadcast %79 : vector<1x8x1xf32> to vector<1x8x32xf32>
    %81 = arith.mulf %77, %80 : vector<1x8x32xf32>
    %82 = vector.shape_cast %81 : vector<1x8x32xf32> to vector<8x32xf32>
    %83 = arith.truncf %82 : vector<8x32xf32> to vector<8x32xbf16>
    %c0_24 = arith.constant 0 : index
    %c0_25 = arith.constant 0 : index
    %84 = vector.load %arg7[%c0_24, %c0_25] : memref<32x32xbf16, #tpu.memory_space<vmem>>, vector<32x32xbf16>
    %cst_26 = arith.constant dense<0.000000e+00> : vector<8x32xf32>
    %85 = tpu.matmul %83, %84, %cst_26 {dimension_numbers = #tpu.dot_dimension_numbers<[1], [0], [0], [1], [0, 0, 1, 1], [], []>} : vector<8x32xbf16>, vector<32x32xbf16>, vector<8x32xf32> -> vector<8x32xf32>
    %c0_27 = arith.constant 0 : index
    %c0_28 = arith.constant 0 : index
    %86 = vector.load %arg8[%c0_27, %c0_28] : memref<1x32xf32, #tpu.memory_space<vmem>>, vector<1x32xf32>
    %87 = vector.broadcast %86 : vector<1x32xf32> to vector<8x32xf32>
    %88 = arith.addf %85, %87 : vector<8x32xf32>
    %89 = arith.addf %43, %88 : vector<8x32xf32>
    %c0_29 = arith.constant 0 : index
    %c0_30 = arith.constant 0 : index
    %90 = vector.load %arg13[%c0_29, %c0_30] : memref<1x32xf32, #tpu.memory_space<vmem>>, vector<1x32xf32>
    %c0_31 = arith.constant 0 : index
    %c0_32 = arith.constant 0 : index
    %91 = vector.load %arg14[%c0_31, %c0_32] : memref<1x32xf32, #tpu.memory_space<vmem>>, vector<1x32xf32>
    %cst_33 = arith.constant dense<0.000000e+00> : vector<8xf32>
    %92 = vector.multi_reduction <add>, %89, %cst_33 [1] : vector<8x32xf32> to vector<8xf32>
    %93 = vector.shape_cast %92 : vector<8xf32> to vector<8x1xf32>
    %cst_34 = arith.constant 3.200000e+01 : f32
    %94 = vector.broadcast %cst_34 : f32 to vector<8x1xf32>
    %95 = arith.divf %93, %94 : vector<8x1xf32>
    %96 = vector.broadcast %95 : vector<8x1xf32> to vector<8x32xf32>
    %97 = arith.subf %89, %96 : vector<8x32xf32>
    %98 = arith.mulf %97, %97 : vector<8x32xf32>
    %cst_35 = arith.constant dense<0.000000e+00> : vector<8xf32>
    %99 = vector.multi_reduction <add>, %98, %cst_35 [1] : vector<8x32xf32> to vector<8xf32>
    %100 = vector.shape_cast %99 : vector<8xf32> to vector<8x1xf32>
    %cst_36 = arith.constant 3.200000e+01 : f32
    %101 = vector.broadcast %cst_36 : f32 to vector<8x1xf32>
    %102 = arith.divf %100, %101 : vector<8x1xf32>
    %103 = vector.broadcast %95 : vector<8x1xf32> to vector<8x32xf32>
    %104 = arith.subf %89, %103 : vector<8x32xf32>
    %cst_37 = arith.constant 9.99999974E-6 : f32
    %105 = vector.broadcast %cst_37 : f32 to vector<8x1xf32>
    %106 = arith.addf %102, %105 : vector<8x1xf32>
    %107 = math.rsqrt %106 : vector<8x1xf32>
    %108 = vector.broadcast %107 : vector<8x1xf32> to vector<8x32xf32>
    %109 = arith.mulf %104, %108 : vector<8x32xf32>
    %110 = vector.broadcast %90 : vector<1x32xf32> to vector<8x32xf32>
    %111 = arith.mulf %109, %110 : vector<8x32xf32>
    %112 = vector.broadcast %91 : vector<1x32xf32> to vector<8x32xf32>
    %113 = arith.addf %111, %112 : vector<8x32xf32>
    %114 = arith.truncf %113 : vector<8x32xf32> to vector<8x32xbf16>
    %c0_38 = arith.constant 0 : index
    %c0_39 = arith.constant 0 : index
    %115 = vector.load %arg9[%c0_38, %c0_39] : memref<32x64xbf16, #tpu.memory_space<vmem>>, vector<32x64xbf16>
    %cst_40 = arith.constant dense<0.000000e+00> : vector<8x64xf32>
    %116 = tpu.matmul %114, %115, %cst_40 {dimension_numbers = #tpu.dot_dimension_numbers<[1], [0], [0], [1], [0, 0, 1, 1], [], []>} : vector<8x32xbf16>, vector<32x64xbf16>, vector<8x64xf32> -> vector<8x64xf32>
    %c0_41 = arith.constant 0 : index
    %c0_42 = arith.constant 0 : index
    %117 = vector.load %arg10[%c0_41, %c0_42] : memref<1x64xf32, #tpu.memory_space<vmem>>, vector<1x64xf32>
    %118 = vector.broadcast %117 : vector<1x64xf32> to vector<8x64xf32>
    %119 = arith.addf %116, %118 : vector<8x64xf32>
    %cst_43 = arith.constant 0.000000e+00 : f32
    %120 = vector.broadcast %cst_43 : f32 to vector<8x64xf32>
    %121 = arith.maximumf %119, %120 : vector<8x64xf32>
    %122 = arith.truncf %121 : vector<8x64xf32> to vector<8x64xbf16>
    %c0_44 = arith.constant 0 : index
    %c0_45 = arith.constant 0 : index
    %123 = vector.load %arg11[%c0_44, %c0_45] : memref<64x32xbf16, #tpu.memory_space<vmem>>, vector<64x32xbf16>
    %cst_46 = arith.constant dense<0.000000e+00> : vector<8x32xf32>
    %124 = tpu.matmul %122, %123, %cst_46 {dimension_numbers = #tpu.dot_dimension_numbers<[1], [0], [0], [1], [0, 0, 1, 1], [], []>} : vector<8x64xbf16>, vector<64x32xbf16>, vector<8x32xf32> -> vector<8x32xf32>
    %c0_47 = arith.constant 0 : index
    %c0_48 = arith.constant 0 : index
    %125 = vector.load %arg12[%c0_47, %c0_48] : memref<1x32xf32, #tpu.memory_space<vmem>>, vector<1x32xf32>
    %126 = vector.broadcast %125 : vector<1x32xf32> to vector<8x32xf32>
    %127 = arith.addf %124, %126 : vector<8x32xf32>
    %128 = arith.addf %113, %127 : vector<8x32xf32>
    %c0_49 = arith.constant 0 : index
    %c0_50 = arith.constant 0 : index
    %129 = vector.load %arg15[%c0_49, %c0_50] : memref<1x32xf32, #tpu.memory_space<vmem>>, vector<1x32xf32>
    %c0_51 = arith.constant 0 : index
    %c0_52 = arith.constant 0 : index
    %130 = vector.load %arg16[%c0_51, %c0_52] : memref<1x32xf32, #tpu.memory_space<vmem>>, vector<1x32xf32>
    %cst_53 = arith.constant dense<0.000000e+00> : vector<8xf32>
    %131 = vector.multi_reduction <add>, %128, %cst_53 [1] : vector<8x32xf32> to vector<8xf32>
    %132 = vector.shape_cast %131 : vector<8xf32> to vector<8x1xf32>
    %cst_54 = arith.constant 3.200000e+01 : f32
    %133 = vector.broadcast %cst_54 : f32 to vector<8x1xf32>
    %134 = arith.divf %132, %133 : vector<8x1xf32>
    %135 = vector.broadcast %134 : vector<8x1xf32> to vector<8x32xf32>
    %136 = arith.subf %128, %135 : vector<8x32xf32>
    %137 = arith.mulf %136, %136 : vector<8x32xf32>
    %cst_55 = arith.constant dense<0.000000e+00> : vector<8xf32>
    %138 = vector.multi_reduction <add>, %137, %cst_55 [1] : vector<8x32xf32> to vector<8xf32>
    %139 = vector.shape_cast %138 : vector<8xf32> to vector<8x1xf32>
    %cst_56 = arith.constant 3.200000e+01 : f32
    %140 = vector.broadcast %cst_56 : f32 to vector<8x1xf32>
    %141 = arith.divf %139, %140 : vector<8x1xf32>
    %142 = vector.broadcast %134 : vector<8x1xf32> to vector<8x32xf32>
    %143 = arith.subf %128, %142 : vector<8x32xf32>
    %cst_57 = arith.constant 9.99999974E-6 : f32
    %144 = vector.broadcast %cst_57 : f32 to vector<8x1xf32>
    %145 = arith.addf %141, %144 : vector<8x1xf32>
    %146 = math.rsqrt %145 : vector<8x1xf32>
    %147 = vector.broadcast %146 : vector<8x1xf32> to vector<8x32xf32>
    %148 = arith.mulf %143, %147 : vector<8x32xf32>
    %149 = vector.broadcast %129 : vector<1x32xf32> to vector<8x32xf32>
    %150 = arith.mulf %148, %149 : vector<8x32xf32>
    %151 = vector.broadcast %130 : vector<1x32xf32> to vector<8x32xf32>
    %152 = arith.addf %150, %151 : vector<8x32xf32>
    %153 = vector.shape_cast %152 : vector<8x32xf32> to vector<1x8x32xf32>
    %c0_58 = arith.constant 0 : index
    %c0_59 = arith.constant 0 : index
    %c0_60 = arith.constant 0 : index
    %154 = vector.load %arg17[%c0_58, %c0_59, %c0_60] : memref<1x8x32xf32, #tpu.memory_space<vmem>>, vector<1x8x32xf32>
    tpu.vector_store %arg17[%c0_58, %c0_59, %c0_60], %153 {strides = array<i32>} : memref<1x8x32xf32, #tpu.memory_space<vmem>>, vector<1x8x32xf32>,
    return
  }
  func.func @transform_0(%arg0: i32, %arg1: memref<1xi32, #tpu.memory_space<smem>>) -> (i32, i32, i32) {
    %c0_i32 = arith.constant 0 : i32
    %c0_i32_0 = arith.constant 0 : i32
    %c0_i32_1 = arith.constant 0 : i32
    return %arg0, %c0_i32, %c0_i32_0 : i32, i32, i32
  }
  func.func @transform_1(%arg0: i32, %arg1: memref<1xi32, #tpu.memory_space<smem>>) -> (i32, i32) {
    %c0_i32 = arith.constant 0 : i32
    %c0_i32_0 = arith.constant 0 : i32
    %c0_i32_1 = arith.constant 0 : i32
    return %c0_i32, %c0_i32_0 : i32, i32
  }
  func.func @transform_2(%arg0: i32, %arg1: memref<1xi32, #tpu.memory_space<smem>>) -> (i32, i32, i32) {
    %c0_i32 = arith.constant 0 : i32
    %c0_i32_0 = arith.constant 0 : i32
    %c0_i32_1 = arith.constant 0 : i32
    return %arg0, %c0_i32, %c0_i32_0 : i32, i32, i32
  }
  func.func @transform_3(%arg0: i32, %arg1: memref<1xi32, #tpu.memory_space<smem>>) -> (i32, i32) {
    %c0_i32 = arith.constant 0 : i32
    %c0_i32_0 = arith.constant 0 : i32
    %c0_i32_1 = arith.constant 0 : i32
    return %c0_i32, %c0_i32_0 : i32, i32
  }
  func.func @transform_4(%arg0: i32, %arg1: memref<1xi32, #tpu.memory_space<smem>>) -> (i32, i32) {
    %c0_i32 = arith.constant 0 : i32
    %c0_i32_0 = arith.constant 0 : i32
    %c0_i32_1 = arith.constant 0 : i32
    return %c0_i32, %c0_i32_0 : i32, i32
  }
  func.func @transform_5(%arg0: i32, %arg1: memref<1xi32, #tpu.memory_space<smem>>) -> (i32, i32) {
    %c0_i32 = arith.constant 0 : i32
    %c0_i32_0 = arith.constant 0 : i32
    %c0_i32_1 = arith.constant 0 : i32
    return %c0_i32, %c0_i32_0 : i32, i32
  }
  func.func @transform_6(%arg0: i32, %arg1: memref<1xi32, #tpu.memory_space<smem>>) -> (i32, i32) {
    %c0_i32 = arith.constant 0 : i32
    %c0_i32_0 = arith.constant 0 : i32
    %c0_i32_1 = arith.constant 0 : i32
    return %c0_i32, %c0_i32_0 : i32, i32
  }
  func.func @transform_7(%arg0: i32, %arg1: memref<1xi32, #tpu.memory_space<smem>>) -> (i32, i32) {
    %c0_i32 = arith.constant 0 : i32
    %c0_i32_0 = arith.constant 0 : i32
    %c0_i32_1 = arith.constant 0 : i32
    return %c0_i32, %c0_i32_0 : i32, i32
  }
  func.func @transform_8(%arg0: i32, %arg1: memref<1xi32, #tpu.memory_space<smem>>) -> (i32, i32) {
    %c0_i32 = arith.constant 0 : i32
    %c0_i32_0 = arith.constant 0 : i32
    %c0_i32_1 = arith.constant 0 : i32
    return %c0_i32, %c0_i32_0 : i32, i32
  }
  func.func @transform_9(%arg0: i32, %arg1: memref<1xi32, #tpu.memory_space<smem>>) -> (i32, i32) {
    %c0_i32 = arith.constant 0 : i32
    %c0_i32_0 = arith.constant 0 : i32
    %c0_i32_1 = arith.constant 0 : i32
    return %c0_i32, %c0_i32_0 : i32, i32
  }
  func.func @transform_10(%arg0: i32, %arg1: memref<1xi32, #tpu.memory_space<smem>>) -> (i32, i32) {
    %c0_i32 = arith.constant 0 : i32
    %c0_i32_0 = arith.constant 0 : i32
    %c0_i32_1 = arith.constant 0 : i32
    return %c0_i32, %c0_i32_0 : i32, i32
  }
  func.func @transform_11(%arg0: i32, %arg1: memref<1xi32, #tpu.memory_space<smem>>) -> (i32, i32) {
    %c0_i32 = arith.constant 0 : i32
    %c0_i32_0 = arith.constant 0 : i32
    %c0_i32_1 = arith.constant 0 : i32
    return %c0_i32, %c0_i32_0 : i32, i32
  }
  func.func @transform_12(%arg0: i32, %arg1: memref<1xi32, #tpu.memory_space<smem>>) -> (i32, i32) {
    %c0_i32 = arith.constant 0 : i32
    %c0_i32_0 = arith.constant 0 : i32
    %c0_i32_1 = arith.constant 0 : i32
    return %c0_i32, %c0_i32_0 : i32, i32
  }
  func.func @transform_13(%arg0: i32, %arg1: memref<1xi32, #tpu.memory_space<smem>>) -> (i32, i32) {
    %c0_i32 = arith.constant 0 : i32
    %c0_i32_0 = arith.constant 0 : i32
    %c0_i32_1 = arith.constant 0 : i32
    return %c0_i32, %c0_i32_0 : i32, i32
  }
  func.func @transform_14(%arg0: i32, %arg1: memref<1xi32, #tpu.memory_space<smem>>) -> (i32, i32) {
    %c0_i32 = arith.constant 0 : i32
    %c0_i32_0 = arith.constant 0 : i32
    %c0_i32_1 = arith.constant 0 : i32
    return %c0_i32, %c0_i32_0 : i32, i32
  }
  func.func @transform_15(%arg0: i32, %arg1: memref<1xi32, #tpu.memory_space<smem>>) -> (i32, i32, i32) {
    %c0_i32 = arith.constant 0 : i32
    %c0_i32_0 = arith.constant 0 : i32
    %c0_i32_1 = arith.constant 0 : i32
    return %arg0, %c0_i32, %c0_i32_0 : i32, i32, i32
  }
}

</mosaic_0001>

<bundles_post_ra>
// kernel: tpu_custom_call.1
= control target key start
LH: loop header
LB: loop body
LE: loop exit
PB: predicated region body
PF: predicated region fallthrough
CT: control target
= control target key end

     0   :  { %s1832_s0 = inlined_call_operand.<no memory space> [shape: s32[1], index: 0, kind: input, shape index: {}]   ;;  %s1833_s1 = inlined_call_operand.vmem [shape: f32[2,8,32], index: 1, kind: input, shape index: {}]   ;;  %s1834_s2 = inlined_call_operand.hbm [shape: f32[8,32], index: 2, kind: input, shape index: {}]   ;;  %s1835_s3 = inlined_call_operand.vmem [shape: f32[2,1,8], index: 3, kind: input, shape index: {}]   ;;  %s1836_s4 = inlined_call_operand.vmem [shape: bf16[32,96], index: 4, kind: input, shape index: {}]   ;;  %s1837_s5 = inlined_call_operand.vmem [shape: f32[1,96], index: 5, kind: input, shape index: {}]   ;;  %s1838_s6 = inlined_call_operand.vmem [shape: bf16[32,32], index: 6, kind: input, shape index: {}]   ;;  %s1839_s7 = inlined_call_operand.vmem [shape: f32[1,32], index: 7, kind: input, shape index: {}]   ;;  %s1840_s8 = inlined_call_operand.hbm [shape: bf16[32,64], index: 8, kind: input, shape index: {}]   ;;  %s1841_s9 = inlined_call_operand.vmem [shape: f32[1,64], index: 9, kind: input, shape index: {}]   ;;  %s1842_s10 = inlined_call_operand.vmem [shape: bf16[64,32], index: 10, kind: input, shape index: {}]   ;;  %s1843_s11 = inlined_call_operand.vmem [shape: f32[1,32], index: 11, kind: input, shape index: {}]   ;;  %s1844_s12 = inlined_call_operand.vmem [shape: f32[1,32], index: 12, kind: input, shape index: {}]   ;;  %s1845_s13 = inlined_call_operand.vmem [shape: f32[1,32], index: 13, kind: input, shape index: {}]   ;;  %s1846_s14 = inlined_call_operand.vmem [shape: f32[1,32], index: 14, kind: input, shape index: {}]   ;;  %s1847_s15 = inlined_call_operand.vmem [shape: f32[1,32], index: 15, kind: input, shape index: {}]   ;;  %s1848_s16 = inlined_call_operand.hbm [shape: f32[2,8,32], index: 16, kind: output, shape index: {}]  }
   0x1   :  { %1859 = sst [smem:[#allocation19_spill]] %s1832_s0 }
   0x2   :  { %1860 = sst [smem:[#allocation20_spill]] %s1848_s16  ;;  %s1861_s23 = sld [smem:[#allocation19_spill]] }
   0x8   :  { %21 = sst [smem:[#allocation3]] %s1861_s23 }
   0x9   :  { %22 = vsyncpa [#allocation5], 0 }
   0xa   :  { %23 = vsyncpa [#allocation8], 0 }
   0xb   :  { %24 = vsyncpa [#allocation6], 0 }
   0xc   :  { %26 = vsyncpa [#allocation6 + $0x1], 0  ;;  %s1561_s24 = smov 0   ;;  %s1563_s25 = smov 0  }
   0xd   :  { %s1565_s26 = smov 0   ;;  %s1567_s27 = smov 0  }
   0xe LB: > { %1862 = sst [smem:[#allocation13_spill]] %s1450_s24  ;;  %s1582_s28 = sadd.s32 4294967295, %s1462_s27   ;;  %s1462_s27 = sphi %s1567_s27, %s1883_s27   ;;  %s1458_s26 = sphi %s1565_s26, %s1885_s26   ;;  %s1454_s25 = sphi %s1563_s25, %s1887_s25   ;;  %s1450_s24 = sphi %s1561_s24, %s1886_s24  }
   0xf   : > { %1863 = sst [smem:[#allocation14_spill]] %s1458_s26  ;;  %s1143_s29 = sadd.s32 4294967294, %s1462_s27  }
  0x10   : > { %1864 = sst [smem:[#allocation15_spill]] %s1462_s27  ;;  %s1586_s30 = sadd.s32 1, %s1462_s27  }
  0x11   : > { %1865 = sst [smem:[#allocation16_spill]] %s1586_s30  ;;  %s364_s0 = sadd.s32 1, %s1458_s26 }
  0x12   : > { %s361_s17 = ssub.s32 %s1462_s27, %s1586_s30  ;;  %p374_p0 = scmp.ne.s32.totalorder %s1458_s26, %s1454_s25 }
  0x13   : > { %p362_p1 = scmp.eq.s32.totalorder %s361_s17, 0  ;;  %p375_p2 = scmp.eq.s32.totalorder %s1582_s28, 1 }
  0x14   : > { %p380_p3 = scmp.ne.s32.totalorder %s1454_s25, %s1450_s24  ;;  %p381_p4 = scmp.eq.s32.totalorder %s1143_s29, 1 }
  0x15   : > { %s1597_s18 = scalar_select %p362_p1, %s1458_s26, %s364_s0  }
  0x16   : > { %p1599_p5 = por %p375_p2, %p374_p0  ;;  %p1603_p6 = por %p381_p4, %p380_p3 }
  0x17   : > { %1866 = sst [smem:[#allocation17_spill]] %s1597_s18  ;;  %p1144_p7 = scmp.ge.s32.totalorder %s1462_s27, 1 }
  0x18   : > { %s1867_s19 = scalar_select %p1599_p5, 1, 0 }
  0x19   : > { %s1868_s20 = scalar_select %p1603_p6, 1, 0 }
  0x1a   : > { %p388_p8 = scmp.lt.s32.totalorder %s1462_s27, 3  ;;  %p1855_p9 = scmp.eq.s32.totalorder %s1582_s28, 0 }
  0x1b   : > { %1869 = sst [smem:[#allocation18_spill]] %s1868_s20  ;;  %s1464_s22 = smov [#allocation4]  }
  0x1c   : > { %p1610_p10 = pnand %p1144_p7, %p388_p8  ;;  %s401_s23 = sshll.u32 %s1464_s22, 4  ;;  %s402_s23 = int_to_ptr.vmem [resolvable:$true] %s401_s23 }
  0x1d   : > { %s1465_s29 = smov [#allocation7]   ;;  %s1336_s30 = scalar_lea.hbm %s1834_s2, 128 }
  0x1e   : > { %s1870_s21 = scalar_select %p1610_p10, 1, 0 }
  0x1f   : > { %p1262_p11 = pneg %p1610_p10  ;;  %s423_s0 = sshll.u32 %s1465_s29, 4  ;;  %s1622_s0 = int_to_ptr.vmem [resolvable:$true] %s423_s0 }
  0x20   : > { %p1337_p13 = scmp.ne.s32.totalorder %s1834_s2, %s1336_s30  ;;  %p1343_p3 = scmp.lt.u32.totalorder %s1336_s30, %s1834_s2 }
  0x21   : > { %p1618_p12 = pnand %p1855_p9, %p1262_p11 }
  0x23   : > { %p1338_p0 = pneg %p1618_p12 }
  0x25   : > { %p1339_p1 = pnand %p1338_p0, %p1337_p13 }
  0x27   : > { %p1340_p2 = pneg %p1339_p1 }
  0x29   : > { %p1345_p4 = pnand %p1343_p3, %p1340_p2 }
  0x2b   : > { %1348 = shalt.err (!%p1345_p4)
}
  0x2c   : > { %s1349_s27 = scalar_lea.vmem %s402_s23, 128  ;;  %p1357_p9 = scmp.lt.s32.totalorder %s402_s23, %s402_s23 }
  0x2d   : > { %p1350_p7 = scmp.ne.s32.totalorder %s402_s23, %s1349_s27  ;;  %p1358_p6 = scmp.lt.s32.totalorder %s1349_s27, %s1349_s27 }
  0x2f   : > { %p1352_p8 = pnand %p1350_p7, %p1338_p0  ;;  %p1359_p5 = por %p1358_p6, %p1357_p9 }
  0x31   : > { %p1353_p11 = pneg %p1352_p8 }
  0x33   : > { %p1360_p10 = pnand %p1359_p5, %p1353_p11 }
  0x35   : > { %1363 = shalt.err (!%p1360_p10)
}
  0x36   : > { %1265 = dma.hbm_to_vmem [thread:$0]  (!%p1618_p12), %s1834_s2, 128, %s402_s23, [#allocation5]  }
  0x37   : > { %s1364_s20 = scalar_lea.hbm %s1840_s8, 256 }
  0x38   : > { %p1365_p13 = scmp.ne.s32.totalorder %s1840_s8, %s1364_s20  ;;  %p1371_p9 = scmp.lt.u32.totalorder %s1364_s20, %s1840_s8 }
  0x3a   : > { %p1367_p6 = pnand %p1365_p13, %p1338_p0 }
  0x3c   : > { %p1368_p5 = pneg %p1367_p6 }
  0x3e   : > { %p1373_p10 = pnand %p1371_p9, %p1368_p5 }
  0x40   : > { %1376 = shalt.err (!%p1373_p10)
}
  0x41   : > { %s1377_s23 = scalar_lea.vmem %s1622_s0, 256  ;;  %p1385_p4 = scmp.lt.s32.totalorder %s1622_s0, %s1622_s0 }
  0x42   : > { %p1378_p1 = scmp.ne.s32.totalorder %s1622_s0, %s1377_s23  ;;  %p1386_p7 = scmp.lt.s32.totalorder %s1377_s23, %s1377_s23 }
  0x44   : > { %p1380_p2 = pnand %p1378_p1, %p1338_p0  ;;  %p1387_p8 = por %p1386_p7, %p1385_p4 }
  0x46   : > { %p1381_p3 = pneg %p1380_p2 }
  0x48   : > { %p1388_p11 = pnand %p1387_p8, %p1381_p3 }
  0x4a   : > { %1391 = shalt.err (!%p1388_p11)
}
  0x4b   : > { %s1466_s16 = smov 64   ;;  %s1467_s26 = smov 4  }
  0x4c   : > { %1268 = dma.hbm_to_vmem [thread:$0]  (!%p1618_p12), %s1840_s8, 256, %s1622_s0, [#allocation8], %s1466_s16, %s1466_s16, %s1467_s26  }
  0x4d   : > { %p1872_p13 = scmp.ne.s32.totalorder %s1870_s21, 0 }
  0x4e   : > { %p1873_p0 = scmp.eq.s32.totalorder (!%p1872_p13), %s1582_s28, 0 }
  0x4f   : > { %473 = sbr.rel (%p1872_p13) target bundleno = 2347 (0x92b), region = 80 }
  0x56   : > { %1437 = dma.done.wait (%p1873_p0), [#allocation5], 128   ;;  %p1874_p6 = pmov %p1873_p0 }
  0x57   : > { %p1875_p5 = pmov %p1873_p0 }
  0x58   : > { %1439 = vsyncadd (%p1874_p6), [#allocation5], 4294967168 }
  0x59   : > { %1441 = dma.done.wait (%p1875_p5), [#allocation8], 256   ;;  %p1876_p9 = pmov %p1873_p0 }
  0x5a   : > { %s1153_s17 = sshll.u32 %s1582_s28, 3  ;;  %v540_v0 = vlaneseq  ;;  %v1468_v1 = vmov 0.0   ;;  %vm1469_vm0 = vmmov 0   ;;  %s539_s21 = sld [smem:[#allocation3]]  ;;  %v1318_v7 = vld [vmem:[%s1836_s4] sm:$0xff]   ;;  %v1319_v9 = vld [vmem:[%s1836_s4 + $0x8] sm:$0xff]  }
  0x5b   : > { %1443 = vsyncadd (%p1876_p9), [#allocation8], 4294967040  ;;  %1204 = vmatprep.subr.bf16.mxu0 %v1468_v1  ;;  %1208 = vmatprep.mubr.msk.bf16.mxu0 %vm1469_vm0, %v1468_v1  ;;  %v542_v2 = vstv %s1153_s17  ;;  %p527_p12 = scmp.lt.s32.totalorder %s1582_s28, 1  ;;  %v536_v17 = vld [vmem:[#allocation4] sm:$0xff]  ;;  %vm590_vm2 = vcmask 261120   ;;  %s1471_s0 = smov 96  }
  0x5c   : > { %v1685_v3 = vshrl.u32 %v540_v0, 7  ;;  %1212 = vmatprep.subr.bf16.mxu1 %v1468_v1  ;;  %1214 = vmatprep.mubr.msk.bf16.mxu1 %vm1469_vm0, %v1468_v1  ;;  %v545_v5 = vand.u32 127, %v540_v0  ;;  %v1157_v27 = vld [vmem:[%s1837_s5] ss:$0 sm:$0xff]  ;;  %vm711_vm3 = vcmask 1043456   ;;  %vm695_vm4 = vcmask 64512  }
  0x5d   : > { %1205 = vmatpush3.bf16.msra.mxu0 %v1318_v7  ;;  %s1700_s27 = scalar_select %p527_p12, %s1582_s28, 1  ;;  %v1320_v56 = vld [vmem:[%s1838_s6] sm:$0xff]   ;;  %v1321_v57 = vld [vmem:[%s1838_s6 + $0x8] sm:$0xff]   ;;  %vm964_vm5 = vcmask 523264  }
  0x5e   : > { %v543_v4 = vadd.s32 %v542_v2, %v1685_v3  ;;  %1206 = vmatprep.subr.bf16.mxu0 %v1468_v1  ;;  %v691_v41 = vsub.s32 0, %v1685_v3  ;;  %v1164_v3 = vld [vmem:[%s1839_s7] ss:$0 sm:$0xff]  ;;  %s1877_s17 = sld [smem:[#allocation20_spill]]  ;;  %p1878_p1 = scmp.ne.s32.totalorder %s1867_s19, 0 }
  0x5f   : > { %s1152_s23 = sshll.u32 %s1700_s27, 3  ;;  %s533_s22 = scalar_lea.vmem %s1835_s3, %s1700_s27 }
  0x60   : > { %v546_v6 = vmul.u32 32, %v543_v4  ;;  %s548_s29 = smul.u32 2654435769, %s539_s21  ;;  %s530_s18 = scalar_lea.vmem %s1833_s1, %s1152_s23  ;;  %v634_v38 = vld [vmem:[%s533_s22] sm:$0x1] }
  0x61   : > { %1207 = vmatpush3.bf16.msra.mxu0 %v1319_v9  ;;  %v535_v16 = vld [vmem:[%s530_s18] sm:$0xff]  ;;  %s1470_s21 = smov 64   ;;  %v1161_v39 = vadd.f32 -1.0, %v634_v38  ;;  %s1183_s23 = sshll.u32 %s1582_s28, 7 }
  0x62   : > { %v547_v8 = vadd.s32 %v546_v6, %v545_v5  ;;  %v549_v10 = vstv %s548_s29  ;;  %1218 = vmatprep.subr.bf16.mxu0 %v1468_v1  ;;  %v537_v20 = vadd.f32 %v536_v17, %v535_v16  ;;  %v1322_v16 = vld [vmem:[#allocation7] sm:$0xff]   ;;  %v1323_v17 = vld [vmem:[#allocation7 + $0x8] sm:$0xff]   ;;  %s1472_s28 = smov [#allocation9]  }
  0x63   : > { %v636_v40 = vmul.f32 1e+09, %v1161_v39 }
  0x64   : > { %v550_v11 = vxor.u32 %v549_v10, %v547_v8  ;;  %v564_v23 = vmul.f32 1.1111112, %v537_v20 }
  0x65   : > { %v692_v42 = vrot.slane %v636_v40, %v691_v41 }
  0x66   : > { %v1154_v12 = vshrl.u32 %v550_v11, 16 }
  0x68   : > { %v553_v13 = vxor.u32 %v1154_v12, %v550_v11 }
  0x6a   : > { %v554_v14 = vmul.u32 2146121005, %v553_v13 }
  0x6c   : > { %v1155_v15 = vshrl.u32 %v554_v14, 15 }
  0x6e   : > { %v557_v18 = vxor.u32 %v1155_v15, %v554_v14 }
  0x70   : > { %v558_v19 = vmul.u32 2221713035, %v557_v18  ;;  %v1324_v18 = vld [vmem:[%s1842_s10] sm:$0xff]  }
  0x72   : > { %v1156_v21 = vshrl.u32 %v558_v19, 16 }
  0x74   : > { %v561_v22 = vxor.u32 %v1156_v21, %v558_v19  ;;  %v1325_v19 = vld [vmem:[%s1842_s10 + $0x8] sm:$0xff]  }
  0x76   : > { %v562_v24 = vand.u32 2147483647, %v561_v22 }
  0x78   : > { %vm563_vm1 = vcmp.ge.s32.totalorder %v562_v24, 214748364  ;;  %v1168_v24 = vld [vmem:[%s1844_s12] ss:$0 sm:$0xff] }
  0x79   : > { %v1707_v25 = vsel %vm563_vm1, %v564_v23, 0.0 }
  0x7a   : > { %v566_v26 = vpack.c.bf16 %v1707_v25, %v1707_v25 }
  0x7c   : > { %1209 = vmatmul.mubr.msk.bf16.vlgmr.msra.gmra.mrb[0].mxu0 %vm590_vm2, %v566_v26  ;;  %v1169_v26 = vld [vmem:[%s1845_s13] ss:$0 sm:$0xff] }
  0x7d   : > { %1220 = vmatprep.mubr.msk.bf16.mxu0 %vm1469_vm0, %v1468_v1 }
 0x14f   : > { %v628_v28 = vpop.f32.mrb[0].mxu0 }
 0x150   : > { %v629_v29 = vadd.f32 %v1157_v27, %v628_v28  ;;  %v1210_v30 = vpop.f32.mrb[1].mxu0 }
 0x151   : > { %v631_v31 = vpop.f32.mrb[2].mxu0  ;;  %v1326_v30 = vld [vmem:[%s1842_s10 + $0x10] sm:$0xff]  }
 0x152   : > { %v637_v32 = vpack.c.bf16 %v629_v29, %v629_v29  ;;  %v1211_v33 = vpop.f32.mrb[3].mxu0  ;;  %v1327_v31 = vld [vmem:[%s1842_s10 + $0x18] sm:$0xff]  }
 0x154   : > { %706 = vrot.lane.b32.xlu1 %v637_v32, %s1470_s21  ;;  %639 = vrot.lane.b32.xlu0 %v637_v32, %s1471_s0  ;;  %s524_s0 = sand.u32 1, %s1454_s25   ;;  %s1789_s21 = scalar_lea.hbm %s1877_s17, %s1183_s23 }
 0x155   : > { %s1151_s30 = sshll.u32 %s524_s0, 3  ;;  %s1040_s20 = scalar_lea.sflag [#allocation6], %s524_s0 }
 0x156   : > { %s526_s16 = scalar_lea.vmem [#allocation9], %s1151_s30  ;;  %s1396_s30 = sshll.u32 %s1472_s28, 4  ;;  %s1397_s30 = int_to_ptr.vmem [resolvable:$false] %s1396_s30 }
 0x157   : > { %s1053_s26 = sshll.u32 %s526_s16, 4  ;;  %s1398_s29 = scalar_lea.vmem %s1397_s30, 256  ;;  %s1791_s26 = int_to_ptr.vmem [resolvable:$true] %s1053_s26 }
 0x158   : > { %s1392_s22 = scalar_lea.vmem %s1791_s26, 128  ;;  %p1399_p4 = scmp.lt.s32.totalorder %s1791_s26, %s1397_s30 }
 0x159   : > { %p1393_p10 = scmp.ne.s32.totalorder %s1791_s26, %s1392_s22  ;;  %p1400_p7 = scmp.lt.s32.totalorder %s1398_s29, %s1392_s22 }
 0x15b   : > { %p1394_p2 = pnand %p1393_p10, %p1878_p1  ;;  %p1401_p8 = por %p1400_p7, %p1399_p4 }
 0x15d   : > { %p1395_p3 = pneg %p1394_p2 }
 0x15f   : > { %p1402_p11 = pnand %p1401_p8, %p1395_p3 }
 0x1c6   : > { %v707_v34 = vpop.permute.xlu1 %706  ;;  %v640_v35 = vpop.permute.xlu0 %639 }
 0x1c7   : > { %v713_v36 = vsel %vm711_vm3, %v707_v34, 0  ;;  %v645_v37 = vsel %vm590_vm2, %v640_v35, 0 }
 0x1c8   : > { %1213 = vmatpush3.bf16.xpose.msra.mxu1 %v645_v37  ;;  %1219 = vmatpush3.bf16.msra.mxu0 %v713_v36 }
 0x1c9   : > { %1224 = vmatprep.subr.bf16.mxu1 %v1468_v1  ;;  %1232 = vmatprep.subr.bf16.mxu0 %v1468_v1 }
 0x1cf   : > { %1215 = vmatmul.mubr.msk.bf16.vlgmr.msra.gmra.mrb[0].mxu1 %vm590_vm2, %v637_v32  ;;  %v1170_v32 = vld [vmem:[%s1841_s9] ss:$0 sm:$0xff] }
 0x1d0   : > { %1228 = vmatprep.mubr.msk.bf16.mxu1 %vm1469_vm0, %v1468_v1  ;;  %1225 = vmatpush3.bf16.msra.mxu1 %v1320_v56  ;;  %v1180_v56 = vld [vmem:[%s1846_s14] ss:$0 sm:$0xff] }
 0x1d1   : > { %1226 = vmatprep.subr.bf16.mxu1 %v1468_v1 }
 0x1d4   : > { %1227 = vmatpush3.bf16.msra.mxu1 %v1321_v57 }
 0x1d5   : > { %1240 = vmatprep.subr.bf16.mxu1 %v1468_v1 }
 0x2a2   : > { %v681_v43 = vpop.f32.mrb[0].mxu1 }
 0x2a3   : > { %v687_v44 = vmul.f32 0.17677669, %v681_v43  ;;  %v1216_v45 = vpop.f32.mrb[1].mxu1 }
 0x2a4   : > { %v684_v46 = vpop.f32.mrb[2].mxu1 }
 0x2a5   : > { %v1217_v47 = vpop.f32.mrb[3].mxu1  ;;  %v694_v48 = vadd.f32 %v692_v42, %v687_v44 }
 0x2a7   : > { %v696_v49 = vsel %vm695_vm4, %v694_v48, -inf }
 0x2a8   : > { %697 = vmax.xlane.f32.xlu0 %v696_v49 }
 0x335   : > { %v698_v50 = vpop.xlane.xlu0 %697 }
 0x336   : > { %v699_v51 = vsub.f32 %v694_v48, %v698_v50 }
 0x338   : > { %v700_v52 = vmul.f32 1.442695, %v699_v51 }
 0x33a   : > { %1328 = vpow2.f32 %v700_v52 }
 0x344   : > { %v1329_v53 = vpop.eup %1328 }
 0x345   : > { %v702_v54 = vsel %vm695_vm4, %v1329_v53, 0.0  ;;  %v705_v55 = vpack.c.bf16 %v1329_v53, %v1329_v53 }
 0x346   : > { %703 = vadd.xlane.f32.xlu1 %v702_v54 }
 0x347   : > { %1221 = vmatmul.mubr.msk.bf16.vlgmr.msra.gmra.mrb[4].mxu0 %vm695_vm4, %v705_v55 }
 0x348   : > { %1236 = vmatprep.mubr.msk.bf16.mxu0 %vm1469_vm0, %v1468_v1  ;;  %1233 = vmatpush3.bf16.msra.mxu0 %v1322_v16 }
 0x349   : > { %1234 = vmatprep.subr.bf16.mxu0 %v1468_v1 }
 0x34c   : > { %1235 = vmatpush3.bf16.msra.mxu0 %v1323_v17 }
 0x3d3   : > { %v704_v58 = vpop.xlane.xlu1 %703 }
 0x3d4   : > { %1330 = vrcp.f32 %v704_v58  ;;  %v1181_v58 = vld [vmem:[%s1847_s15] ss:$0 sm:$0xff] }
 0x3de   : > { %v1331_v59 = vpop.eup %1330 }
 0x41a   : > { %v749_v60 = vpop.f32.mrb[4].mxu0 }
 0x41b   : > { %v757_v61 = vmul.f32 %v1331_v59, %v749_v60  ;;  %v1222_v62 = vpop.f32.mrb[5].mxu0 }
 0x41c   : > { %v752_v63 = vpop.f32.mrb[6].mxu0 }
 0x41d   : > { %v758_v0 = vpack.c.bf16 %v757_v61, %v757_v61  ;;  %v1223_v2 = vpop.f32.mrb[7].mxu0 }
 0x41f   : > { %1229 = vmatmul.mubr.msk.bf16.vlgmr.msra.gmra.mrb[4].mxu1 %vm590_vm2, %v758_v0 }
 0x420   : > { %1248 = vmatprep.mubr.msk.bf16.mxu1 %vm1469_vm0, %v1468_v1  ;;  %1241 = vmatpush3.bf16.msra.mxu1 %v1324_v18 }
 0x421   : > { %1242 = vmatprep.subr.bf16.mxu1 %v1468_v1 }
 0x424   : > { %1243 = vmatpush3.bf16.msra.mxu1 %v1325_v19 }
 0x425   : > { %1244 = vmatprep.subr.bf16.mxu1 %v1468_v1 }
 0x428   : > { %1245 = vmatpush3.bf16.msra.mxu1 %v1326_v30 }
 0x429   : > { %1246 = vmatprep.subr.bf16.mxu1 %v1468_v1  ;;  %v1174_v1 = vld [vmem:[%s1843_s11] ss:$0 sm:$0xff] }
 0x42c   : > { %1247 = vmatpush3.bf16.msra.mxu1 %v1327_v31 }
 0x4f2   : > { %v819_v4 = vpop.f32.mrb[4].mxu1 }
 0x4f3   : > { %v820_v5 = vadd.f32 %v1164_v3, %v819_v4  ;;  %v1230_v6 = vpop.f32.mrb[5].mxu1 }
 0x4f4   : > { %v822_v7 = vpop.f32.mrb[6].mxu1 }
 0x4f5   : > { %v1231_v8 = vpop.f32.mrb[7].mxu1  ;;  %v825_v9 = vadd.f32 %v820_v5, %v1707_v25 }
 0x4f7   : > { %v828_v10 = vsel %vm590_vm2, %v825_v9, 0.0 }
 0x4f8   : > { %829 = vadd.xlane.f32.xlu0 %v828_v10 }
 0x585   : > { %v830_v11 = vpop.xlane.xlu0 %829 }
 0x586   : > { %v832_v12 = vmul.f32 0.03125, %v830_v11 }
 0x588   : > { %v833_v13 = vsub.f32 %v825_v9, %v832_v12 }
 0x58a   : > { %v834_v14 = vmul.f32 %v833_v13, %v833_v13 }
 0x58c   : > { %v835_v15 = vsel %vm590_vm2, %v834_v14, 0.0 }
 0x58d   : > { %836 = vadd.xlane.f32.xlu0 %v835_v15 }
 0x61a   : > { %v837_v20 = vpop.xlane.xlu0 %836 }
 0x61b   : > { %v838_v21 = vmul.f32 0.03125, %v837_v20 }
 0x61d   : > { %v839_v22 = vadd.f32 1e-05, %v838_v21 }
 0x61f   : > { %1332 = vrsqrt.f32 %v839_v22 }
 0x629   : > { %v1333_v23 = vpop.eup %1332 }
 0x62a   : > { %v841_v25 = vmul.f32 %v1333_v23, %v833_v13 }
 0x62c   : > { %v848_v27 = vmul.f32 %v1168_v24, %v841_v25 }
 0x62e   : > { %v855_v28 = vadd.f32 %v1169_v26, %v848_v27 }
 0x630   : > { %v856_v29 = vpack.c.bf16 %v855_v28, %v855_v28 }
 0x632   : > { %1237 = vmatmul.mubr.msk.bf16.vlgmr.msra.gmra.mrb[8].mxu0 %vm590_vm2, %v856_v29 }
 0x705   : > { %v917_v33 = vpop.f32.mrb[8].mxu0 }
 0x706   : > { %v918_v34 = vadd.f32 %v1170_v32, %v917_v33  ;;  %v1238_v35 = vpop.f32.mrb[9].mxu0 }
 0x707   : > { %v920_v36 = vpop.f32.mrb[10].mxu0 }
 0x708   : > { %v923_v37 = vmax.f32 %v918_v34, 0.0  ;;  %v1239_v38 = vpop.f32.mrb[11].mxu0 }
 0x70a   : > { %v924_v39 = vpack.c.bf16 %v923_v37, %v923_v37 }
 0x70c   : > { %1249 = vmatmul.mubr.msk.bf16.vlgmr.msra.gmra.mrb[8].mxu1 %vm964_vm5, %v924_v39 }
 0x7df   : > { %v1002_v40 = vpop.f32.mrb[8].mxu1 }
 0x7e0   : > { %v1003_v41 = vadd.f32 %v1174_v1, %v1002_v40  ;;  %v1250_v42 = vpop.f32.mrb[9].mxu1 }
 0x7e1   : > { %v1005_v43 = vpop.f32.mrb[10].mxu1 }
 0x7e2   : > { %v1251_v44 = vpop.f32.mrb[11].mxu1  ;;  %v1008_v45 = vadd.f32 %v1003_v41, %v855_v28 }
 0x7e4   : > { %v1011_v46 = vsel %vm590_vm2, %v1008_v45, 0.0 }
 0x7e5   : > { %1012 = vadd.xlane.f32.xlu1 %v1011_v46 }
 0x872   : > { %v1013_v47 = vpop.xlane.xlu1 %1012 }
 0x873   : > { %v1014_v48 = vmul.f32 0.03125, %v1013_v47 }
 0x875   : > { %v1015_v49 = vsub.f32 %v1008_v45, %v1014_v48 }
 0x877   : > { %v1016_v50 = vmul.f32 %v1015_v49, %v1015_v49 }
 0x879   : > { %v1017_v51 = vsel %vm590_vm2, %v1016_v50, 0.0 }
 0x87a   : > { %1018 = vadd.xlane.f32.xlu0 %v1017_v51 }
 0x907   : > { %v1019_v52 = vpop.xlane.xlu0 %1018 }
 0x908   : > { %v1020_v53 = vmul.f32 0.03125, %v1019_v52 }
 0x90a   : > { %v1021_v54 = vadd.f32 1e-05, %v1020_v53 }
 0x90c   : > { %1334 = vrsqrt.f32 %v1021_v54 }
 0x916   : > { %v1335_v55 = vpop.eup %1334 }
 0x917   : > { %v1023_v57 = vmul.f32 %v1335_v55, %v1015_v49 }
 0x919   : > { %v1030_v59 = vmul.f32 %v1180_v56, %v1023_v57 }
 0x91b   : > { %v1037_v60 = vadd.f32 %v1181_v58, %v1030_v59 }
 0x91d   : > { %1038 = vst.msk [vmem:[%s526_s16] sm:$0xff] %vm590_vm2, %v1037_v60 }
 0x91e   : > { %1405 = shalt.err (!%p1402_p11)
}
 0x91f   : > { %s1406_s0 = scalar_lea.hbm %s1789_s21, 128  ;;  %s1410_s16 = scalar_lea.hbm %s1877_s17, 256 }
 0x920   : > { %p1407_p13 = scmp.ne.s32.totalorder %s1789_s21, %s1406_s0  ;;  %p1411_p5 = scmp.lt.u32.totalorder %s1789_s21, %s1877_s17 }
 0x921   : > { %p1412_p9 = scmp.lt.u32.totalorder %s1410_s16, %s1406_s0  ;;  %p1414_p10 = scmp.lt.u32.totalorder %s1406_s0, %s1789_s21 }
 0x922   : > { %p1408_p0 = pnand %p1407_p13, %p1878_p1 }
 0x923   : > { %p1413_p12 = por %p1412_p9, %p1411_p5 }
 0x924   : > { %p1409_p6 = pneg %p1408_p0 }
 0x925   : > { %p1415_p2 = por %p1414_p10, %p1413_p12 }
 0x927   : > { %p1416_p3 = pnand %p1415_p2, %p1409_p6 }
 0x929   : > { %1419 = shalt.err (!%p1416_p3)
}
 0x92a   : > { %1260 = dma.vmem_to_hbm [thread:$0]  (%p1878_p1), %s1791_s26, 128, %s1789_s21, %s1040_s20  }
 0x92b PF: > { %s1879_s22 = sld [smem:[#allocation15_spill]]  ;;  %s1880_s28 = sld [smem:[#allocation13_spill]] }
 0x92c   : > { %s1881_s30 = sld [smem:[#allocation18_spill]] }
 0x931   : > { %p1277_p4 = scmp.ge.s32.totalorder %s1879_s22, 2  ;;  %s1065_s29 = sand.u32 1, %s1880_s28  }
 0x932   : > { %p1882_p7 = scmp.ne.s32.totalorder %s1881_s30, 0  ;;  %s1066_s27 = scalar_lea.sflag [#allocation6], %s1065_s29 }
 0x934   : > { %p1270_p8 = pnand %p1277_p4, %p1882_p7 }
 0x936   : > { %1445 = dma.done.wait (!%p1270_p8), %s1066_s27, 128  }
 0x937   : > { %1447 = vsyncadd (!%p1270_p8), %s1066_s27, 4294967168  ;;  %s1883_s27 = sld [smem:[#allocation16_spill]]  ;;  %s1884_s0 = sld [smem:[#allocation14_spill]] }
 0x938   : > { %s1885_s26 = sld [smem:[#allocation17_spill]]  ;;  %s1886_s24 = smov %s1454_s25 }
 0x93d   : > { %p29_p11 = scmp.ge.s32.totalorder %s1883_s27, 4   ;;  %s1887_s25 = smov %s1884_s0 }
 0x93f   :  { %31 = sbr.rel (!%p29_p11) target bundleno = 14 (0xe), region = 127 }
 0x946   :  { %1071 = vsyncpa [#allocation5], 1 }
 0x947   :  { %1073 = vsyncpa [#allocation5 + $0x1], 1 }
 0x948   :  { %1074 = vsyncpa [#allocation8], 1 }
 0x949   :  { %1075 = vsyncpa [#allocation6], 1 }
 0x94a   :  { %1077 = vsyncpa [#allocation6 + $0x1], 1 }

</bundles_post_ra>
